<compile_context>
chip_gen: v7x
topology: tpu7x:2x2x1
jax: 0.10.0
libtpu: 0.0.40
codegen_flags: <defaults>
</compile_context>

<pallas_src>
import functools

import jax
import jax.numpy as jnp
from jax import lax
from jax.experimental import pallas as pl
from jax.experimental.pallas import tpu as pltpu


def _round_up(x: int, m: int) -> int:
    return ((x + m - 1) // m) * m


def _sublane(dtype) -> int:
    # Sublane granule per dtype packing: f32 -> 8, bf16 -> 16, int8/fp8 -> 32.
    return {4: 8, 2: 16, 1: 32}.get(jnp.dtype(dtype).itemsize, 8)


def _linear_kernel(x_ref, w_ref, b_ref, o_ref, *, precision):
    # x: (TM, K_p)  w: (K_p, N_p)  b: (1, N_p)  o: (TM, N_p)
    acc = jnp.dot(
        x_ref[...], w_ref[...],
        preferred_element_type=jnp.float32, precision=precision,
    )
    o_ref[...] = (acc + b_ref[...].astype(jnp.float32)).astype(o_ref.dtype)


def _linear_kernel_ktiled(x_ref, w_ref, b_ref, o_ref, acc_ref, *, precision):
    # Grid = (M tiles, K tiles); K is the last ("arbitrary") axis.
    k = pl.program_id(1)

    @pl.when(k == 0)
    def _():
        acc_ref[...] = jnp.zeros_like(acc_ref)

    acc_ref[...] += jnp.dot(
        x_ref[...], w_ref[...],
        preferred_element_type=jnp.float32, precision=precision,
    )

    @pl.when(k == pl.num_programs(1) - 1)
    def _():
        o_ref[...] = (acc_ref[...] + b_ref[...].astype(jnp.float32)).astype(o_ref.dtype)


@functools.partial(jax.jit, static_argnames=("tm", "compute_dtype"))
def time_distributed_linear(x, weight, bias, *, tm=None, compute_dtype=None):
    """Apply Linear(weight, bias) over every (batch, time) position of x.

    x:      (B, T, D_in)
    weight: (D_out, D_in)   -- PyTorch nn.Linear convention
    bias:   (D_out,)
    returns (B, T, D_out)
    """
    B, T, D_in = x.shape
    D_out = weight.shape[0]
    M = B * T

    out_dtype = x.dtype
    if compute_dtype is not None:
        # Optional bf16 operand path for the compute-bound regime (f32 accum).
        x = x.astype(compute_dtype)
        weight = weight.astype(compute_dtype)
    in_dtype = x.dtype
    in_isz = jnp.dtype(in_dtype).itemsize
    out_isz = jnp.dtype(out_dtype).itemsize
    sublane = _sublane(in_dtype)
    # f32 operands: HIGHEST for parity with PyTorch f32 Linear (default TPU
    # matmul precision can lower f32 to bf16 passes). Narrow dtypes run native.
    precision = lax.Precision.HIGHEST if in_isz == 4 else lax.Precision.DEFAULT

    # --- K-tiling decision: keep the resident weight block under ~12 MiB.
    use_ktiling = (_round_up(D_in, 128) * _round_up(D_out, 128) * in_isz) > (12 << 20)
    if use_ktiling:
        tk = 512                       # multiple of 256: full MXU depth on v6e/v7x
        K_p = _round_up(D_in, tk)
    else:
        tk = None
        K_p = _round_up(D_in, 128)
    N_p = _round_up(D_out, 128)

    # --- TimeDistributed flatten: (B, T, D_in) -> (B*T, D_in).  M is never
    # padded: the grid uses cdiv(M, TM) and Pallas masks the ragged last tile.
    x_flat = x.reshape(M, D_in)
    x_p = x_flat if K_p == D_in else jnp.pad(x_flat, ((0, 0), (0, K_p - D_in)))
    # Weight-stationary layout: W.T of shape (K_p, N_p); zero K/N padding only
    # when the feature dims are not already 128-aligned.
    w_t = weight.T
    if K_p == D_in and N_p == D_out:
        w_p = w_t
    else:
        w_p = jnp.pad(w_t, ((0, K_p - D_in), (0, N_p - D_out)))
    b2 = bias.reshape(1, D_out)
    b_p = b2 if N_p == D_out else jnp.pad(b2, ((0, 0), (0, N_p - D_out)))

    # --- Choose the M tile: big (amortize ~0.35 us/step grid overhead),
    # sublane-granular, clamped by M and by a per-core VMEM target that is safe
    # on every generation (v5e 16 MiB scoped default, v7x 64 MiB physical/TC).
    if tm is None:
        tm_eff = 2048 if (K_p + N_p) <= 512 else 1024
    else:
        tm_eff = int(tm)
    tm_eff = max(sublane, _round_up(min(tm_eff, M), sublane))

    def _stream_bytes(t):
        k_per_step = tk if use_ktiling else K_p
        b = 2 * t * (k_per_step * in_isz + N_p * out_isz)   # x / out double-buffers
        if use_ktiling:
            b += t * N_p * 4                                 # f32 accumulator scratch
        return b

    if use_ktiling:
        # Weight is streamed along K (double-buffered); bias single-buffered.
        resident_bytes = 2 * tk * N_p * in_isz + N_p * in_isz
    else:
        # Weight + bias are grid-invariant and single-buffered (Buffered(1)).
        resident_bytes = K_p * N_p * in_isz + N_p * in_isz

    vmem_target = 28 << 20
    while tm_eff > sublane and _stream_bytes(tm_eff) + resident_bytes > vmem_target:
        tm_eff = max(sublane, _round_up(tm_eff // 2, sublane))

    vmem_limit = int(min(
        max(_stream_bytes(tm_eff) + resident_bytes + (4 << 20), 16 << 20),
        128 << 20,
    ))

    nm = pl.cdiv(M, tm_eff)

    if use_ktiling:
        grid = (nm, K_p // tk)
        in_specs = [
            pl.BlockSpec((tm_eff, tk), lambda i, k: (i, k)),                    # streamed x
            pl.BlockSpec((tk, N_p), lambda i, k: (k, 0)),                       # streamed W.T
            pl.BlockSpec((1, N_p), lambda i, k: (0, 0),
                         pipeline_mode=pl.Buffered(1)),                         # resident bias
        ]
        out_specs = pl.BlockSpec((tm_eff, N_p), lambda i, k: (i, 0))
        scratch_shapes = [pltpu.VMEM((tm_eff, N_p), jnp.float32)]
        kernel = functools.partial(_linear_kernel_ktiled, precision=precision)
        dim_sem = ("parallel", "arbitrary")
        w_reads = nm
    else:
        grid = (nm,)
        in_specs = [
            pl.BlockSpec((tm_eff, K_p), lambda i: (i, 0)),                      # streamed x
            pl.BlockSpec((K_p, N_p), lambda i: (0, 0),
                         pipeline_mode=pl.Buffered(1)),                         # resident W.T
            pl.BlockSpec((1, N_p), lambda i: (0, 0),
                         pipeline_mode=pl.Buffered(1)),                         # resident bias
        ]
        out_specs = pl.BlockSpec((tm_eff, N_p), lambda i: (i, 0))
        scratch_shapes = []
        kernel = functools.partial(_linear_kernel, precision=precision)
        dim_sem = ("parallel",)
        w_reads = 1

    cost = pl.CostEstimate(
        flops=2 * M * K_p * N_p,
        transcendentals=0,
        bytes_accessed=(x_p.size * in_isz
                        + w_p.size * in_isz * w_reads
                        + b_p.size * in_isz
                        + M * N_p * out_isz),
    )

    out_p = pl.pallas_call(
        kernel,
        out_shape=jax.ShapeDtypeStruct((M, N_p), out_dtype),
        grid=grid,
        in_specs=in_specs,
        out_specs=out_specs,
        scratch_shapes=scratch_shapes,
        compiler_params=pltpu.CompilerParams(
            dimension_semantics=dim_sem,
            vmem_limit_bytes=vmem_limit,
        ),
        cost_estimate=cost,
    )(x_p, w_p, b_p)

    # Strip N padding only if any, then un-flatten: (B*T, D_out) -> (B, T, D_out).
    out = out_p if N_p == D_out else out_p[:, :D_out]
    return out.reshape(B, T, D_out)


if __name__ == "__main__":
    # Small deterministic shapes consistent with TimeDistributed over a Linear.
    B, T, D_IN, D_OUT = 2, 8, 32, 32

    key = jax.random.PRNGKey(0)
    kx, kw, kb = jax.random.split(key, 3)

    x = jax.random.normal(kx, (B, T, D_IN), dtype=jnp.float32)
    # Deterministic "Linear" parameters (synthetic, not a checkpoint load).
    weight = jax.random.normal(kw, (D_OUT, D_IN), dtype=jnp.float32) * 0.1
    bias = jax.random.normal(kb, (D_OUT,), dtype=jnp.float32) * 0.1

    out = time_distributed_linear(x, weight, bias)
    out = jax.block_until_ready(out)

    # Reference check (plain JAX) of the TimeDistributed(Linear) semantics.
    ref = (x.reshape(-1, D_IN) @ weight.T + bias).reshape(B, T, D_OUT)
    assert out.shape == (B, T, D_OUT)
    assert jnp.allclose(out, ref, atol=1e-5, rtol=1e-5)

    print("KERNEL_OK")
</pallas_src>

<mosaic_0001>
module attributes {stable_mosaic.version = 11 : i64} {
  func.func @_linear_kernel(%arg0: i32, %arg1: memref<16x128xf32, #tpu.memory_space<vmem>>, %arg2: memref<128x128xf32, #tpu.memory_space<vmem>>, %arg3: memref<1x128xf32, #tpu.memory_space<vmem>>, %arg4: memref<16x128xf32, #tpu.memory_space<vmem>>) attributes {dimension_semantics = [#tpu.dimension_semantics<parallel>], iteration_bounds = array<i64: 1>, scalar_prefetch = 0 : i64, scratch_operands = 0 : i64, tpu.core_type = #tpu.core_type<tc>, window_params = [{transform_indices = @transform_0, window_bounds = array<i64: 16, 128>}, {pipeline_mode = #tpu.pipeline_mode<synchronous>, transform_indices = @transform_1, window_bounds = array<i64: 128, 128>}, {pipeline_mode = #tpu.pipeline_mode<synchronous>, transform_indices = @transform_2, window_bounds = array<i64: 1, 128>}, {transform_indices = @transform_3, window_bounds = array<i64: 16, 128>}]} {
    %c0 = arith.constant 0 : index
    %c0_0 = arith.constant 0 : index
    %0 = vector.load %arg1[%c0, %c0_0] : memref<16x128xf32, #tpu.memory_space<vmem>>, vector<16x128xf32>
    %c0_1 = arith.constant 0 : index
    %c0_2 = arith.constant 0 : index
    %1 = vector.load %arg2[%c0_1, %c0_2] : memref<128x128xf32, #tpu.memory_space<vmem>>, vector<128x128xf32>
    %cst = arith.constant dense<0.000000e+00> : vector<16x128xf32>
    %2 = tpu.matmul %0, %1, %cst {dimension_numbers = #tpu.dot_dimension_numbers<[1], [0], [0], [1], [0, 0, 1, 1], [], []>, precision = #tpu.contract_precision<fp32>} : vector<16x128xf32>, vector<128x128xf32>, vector<16x128xf32> -> vector<16x128xf32>
    %c0_3 = arith.constant 0 : index
    %c0_4 = arith.constant 0 : index
    %3 = vector.load %arg3[%c0_3, %c0_4] : memref<1x128xf32, #tpu.memory_space<vmem>>, vector<1x128xf32>
    %4 = vector.broadcast %3 : vector<1x128xf32> to vector<16x128xf32>
    %5 = arith.addf %2, %4 : vector<16x128xf32>
    %c0_5 = arith.constant 0 : index
    %c0_6 = arith.constant 0 : index
    %6 = vector.load %arg4[%c0_5, %c0_6] : memref<16x128xf32, #tpu.memory_space<vmem>>, vector<16x128xf32>
    tpu.vector_store %arg4[%c0_5, %c0_6], %5 {strides = array<i32>} : memref<16x128xf32, #tpu.memory_space<vmem>>, vector<16x128xf32>,
    return
  }
  func.func @transform_0(%arg0: i32) -> (i32, i32) {
    %c0_i32 = arith.constant 0 : i32
    %c0_i32_0 = arith.constant 0 : i32
    return %arg0, %c0_i32 : i32, i32
  }
  func.func @transform_1(%arg0: i32) -> (i32, i32) {
    %c0_i32 = arith.constant 0 : i32
    %c0_i32_0 = arith.constant 0 : i32
    %c0_i32_1 = arith.constant 0 : i32
    return %c0_i32, %c0_i32_0 : i32, i32
  }
  func.func @transform_2(%arg0: i32) -> (i32, i32) {
    %c0_i32 = arith.constant 0 : i32
    %c0_i32_0 = arith.constant 0 : i32
    %c0_i32_1 = arith.constant 0 : i32
    return %c0_i32, %c0_i32_0 : i32, i32
  }
  func.func @transform_3(%arg0: i32) -> (i32, i32) {
    %c0_i32 = arith.constant 0 : i32
    %c0_i32_0 = arith.constant 0 : i32
    return %arg0, %c0_i32 : i32, i32
  }
}

</mosaic_0001>

<bundles_post_ra>
// kernel: time_distributed_linear.1
= control target key start
LH: loop header
LB: loop body
LE: loop exit
PB: predicated region body
PF: predicated region fallthrough
CT: control target
= control target key end

     0   :  { %s1601_s1 = inlined_call_operand.vmem [shape: f32[128,128], index: 1, kind: input, shape index: {}]   ;;  %s1602_s0 = inlined_call_operand.vmem [shape: f32[16,128], index: 0, kind: input, shape index: {}]   ;;  %s1603_s2 = inlined_call_operand.vmem [shape: f32[1,128], index: 2, kind: input, shape index: {}]   ;;  %s1604_s3 = inlined_call_operand.vmem [shape: f32[16,128], index: 3, kind: output, shape index: {}]  }
   0x1   :  { %v16_v0 = vld [vmem:[%s1601_s1] sm:$0xff]  ;;  %v17_v1 = vld [vmem:[%s1601_s1 + $0x8] sm:$0xff]  ;;  %v18_v2 = vld [vmem:[%s1601_s1 + $0x10] sm:$0xff] }
   0x2   :  { %v40_v3 = vand.u32 4294901760, %v16_v0  ;;  %v43_v4 = vand.u32 4294901760, %v17_v1  ;;  %v1284_v5 = vld [vmem:[%s1601_s1 + $0x18] sm:$0xff]  ;;  %v46_v6 = vand.u32 4294901760, %v18_v2  ;;  %v1289_v7 = vld [vmem:[%s1601_s1 + $0x20] sm:$0xff]  ;;  %v1294_v8 = vld [vmem:[%s1601_s1 + $0x28] sm:$0xff] }
   0x3   :  { %v49_v9 = vand.u32 4294901760, %v1284_v5  ;;  %v52_v11 = vand.u32 4294901760, %v1289_v7  ;;  %v55_v12 = vand.u32 4294901760, %v1294_v8  ;;  %v1306_v14 = vld [vmem:[%s1601_s1 + $0x30] sm:$0xff]  ;;  %v1311_v15 = vld [vmem:[%s1601_s1 + $0x38] sm:$0xff]  ;;  %v14_v16 = vld [vmem:[%s1602_s0] sm:$0xff] }
   0x4   :  { %v1297_v10 = vpack.c.bf16 %v43_v4, %v40_v3  ;;  %v1320_v17 = vand.u32 4294901760, %v14_v16  ;;  %v58_v19 = vand.u32 4294901760, %v1306_v14  ;;  %v61_v20 = vand.u32 4294901760, %v1311_v15  ;;  %v1335_v21 = vld [vmem:[%s1601_s1 + $0x40] sm:$0xff]  ;;  %v1340_v22 = vld [vmem:[%s1601_s1 + $0x48] sm:$0xff]  ;;  %v1361_v28 = vld [vmem:[%s1601_s1 + $0x50] sm:$0xff] }
   0x5   :  { %v1301_v13 = vpack.c.bf16 %v49_v9, %v46_v6  ;;  %v1328_v18 = vpack.c.bf16 %v55_v12, %v52_v11  ;;  %v64_v26 = vand.u32 4294901760, %v1335_v21  ;;  %v67_v27 = vand.u32 4294901760, %v1340_v22  ;;  %v1366_v29 = vld [vmem:[%s1601_s1 + $0x58] sm:$0xff]  ;;  %v15_v32 = vld [vmem:[%s1602_s0 + $0x8] sm:$0xff]  ;;  %v1387_v36 = vld [vmem:[%s1601_s1 + $0x60] sm:$0xff] }
   0x6   :  { %1049 = vmatprep.subr.bf16.mxu1 %v1297_v10  ;;  %1145 = vmatprep.subr.bf16.mxu0 %v1297_v10  ;;  %v1343_v23 = vsub.f32 %v14_v16, %v1320_v17  ;;  %v1354_v25 = vpack.c.bf16 %v61_v20, %v58_v19  ;;  %v70_v31 = vand.u32 4294901760, %v1361_v28  ;;  %v73_v35 = vand.u32 4294901760, %v1366_v29  ;;  %v1392_v37 = vld [vmem:[%s1601_s1 + $0x68] sm:$0xff]  ;;  %v1407_v43 = vld [vmem:[%s1601_s1 + $0x70] sm:$0xff]  ;;  %v1412_v44 = vld [vmem:[%s1601_s1 + $0x78] sm:$0xff] }
   0x7   :  { %1051 = vmatpush3.bf16.msra.mxu1 %v1297_v10  ;;  %1147 = vmatpush3.bf16.msra.mxu0 %v1297_v10  ;;  %v1381_v34 = vpack.c.bf16 %v67_v27, %v64_v26  ;;  %v1394_v38 = vsub.f32 %v16_v0, %v40_v3  ;;  %v1396_v39 = vsub.f32 %v17_v1, %v43_v4  ;;  %v1398_v40 = vand.u32 4294901760, %v15_v32 }
   0x8   :  { %1053 = vmatprep.subr.bf16.mxu1 %v1301_v13  ;;  %1149 = vmatprep.subr.bf16.mxu0 %v1301_v13  ;;  %v122_v24 = vand.u32 4294901760, %v1343_v23  ;;  %v76_v41 = vand.u32 4294901760, %v1387_v36  ;;  %v79_v42 = vand.u32 4294901760, %v1392_v37  ;;  %v1414_v45 = vsub.f32 %v18_v2, %v46_v6 }
   0x9   :  { %v1422_v46 = vpack.c.bf16 %v73_v35, %v70_v31  ;;  %v143_v47 = vand.u32 4294901760, %v1394_v38  ;;  %v150_v48 = vand.u32 4294901760, %v1396_v39  ;;  %v1427_v49 = vsub.f32 %v1284_v5, %v49_v9 }
   0xa   :  { %v123_v30 = vsub.f32 %v1343_v23, %v122_v24  ;;  %975 = vmatprep.mubr.f32.mxu0 %v122_v24  ;;  %v82_v50 = vand.u32 4294901760, %v1407_v43  ;;  %v85_v51 = vand.u32 4294901760, %v1412_v44  ;;  %v1432_v52 = vsub.f32 %v15_v32, %v1398_v40 }
   0xb   :  { %1055 = vmatpush3.bf16.msra.mxu1 %v1301_v13  ;;  %1151 = vmatpush3.bf16.msra.mxu0 %v1301_v13  ;;  %v1440_v53 = vpack.c.bf16 %v79_v42, %v76_v41  ;;  %v157_v54 = vand.u32 4294901760, %v1414_v45  ;;  %v1446_v55 = vsub.f32 %v1289_v7, %v52_v11  ;;  %v144_v56 = vsub.f32 %v1394_v38, %v143_v47 }
   0xc   :  { %1057 = vmatprep.subr.bf16.mxu1 %v1328_v18  ;;  %1153 = vmatprep.subr.bf16.mxu0 %v1328_v18  ;;  %v124_v33 = vand.u32 4294901760, %v123_v30  ;;  %v151_v57 = vsub.f32 %v1396_v39, %v150_v48  ;;  %v164_v58 = vand.u32 4294901760, %v1427_v49  ;;  %v1456_v59 = vsub.f32 %v1294_v8, %v55_v12 }
   0xd   :  { %v1462_v60 = vpack.c.bf16 %v85_v51, %v82_v50  ;;  %v132_v61 = vand.u32 4294901760, %v1432_v52  ;;  %v158_v62 = vsub.f32 %v1414_v45, %v157_v54  ;;  %v171_v63 = vand.u32 4294901760, %v1446_v55 }
   0xe   :  { %870 = vmatprep.mubr.f32.mxu1 %v124_v33  ;;  %v1472_v0 = vsub.f32 %v1306_v14, %v58_v19  ;;  %v1477_v1 = vsub.f32 %v1311_v15, %v61_v20  ;;  %v145_v2 = vand.u32 4294901760, %v144_v56  ;;  %v152_v3 = vand.u32 4294901760, %v151_v57 }
   0xf   :  { %1059 = vmatpush3.bf16.msra.mxu1 %v1328_v18  ;;  %1155 = vmatpush3.bf16.msra.mxu0 %v1328_v18  ;;  %v165_v4 = vsub.f32 %v1427_v49, %v164_v58  ;;  %v178_v5 = vand.u32 4294901760, %v1456_v59  ;;  %v1176_v6 = vpack.c.bf16 %v150_v48, %v143_v47  ;;  %v133_v7 = vsub.f32 %v1432_v52, %v132_v61 }
  0x10   :  { %1061 = vmatprep.subr.bf16.mxu1 %v1354_v25  ;;  %1157 = vmatprep.subr.bf16.mxu0 %v1354_v25  ;;  %v1487_v8 = vsub.f32 %v1335_v21, %v64_v26  ;;  %v159_v9 = vand.u32 4294901760, %v158_v62  ;;  %v172_v11 = vsub.f32 %v1446_v55, %v171_v63  ;;  %v185_v12 = vand.u32 4294901760, %v1472_v0 }
  0x11   :  { %v192_v14 = vand.u32 4294901760, %v1477_v1  ;;  %v1080_v15 = vpack.c.bf16 %v152_v3, %v145_v2  ;;  %v166_v16 = vand.u32 4294901760, %v165_v4  ;;  %v179_v19 = vsub.f32 %v1456_v59, %v178_v5 }
  0x12   :  { %v1500_v20 = vsub.f32 %v1340_v22, %v67_v27  ;;  %v134_v21 = vand.u32 4294901760, %v133_v7  ;;  %v1180_v24 = vpack.c.bf16 %v164_v58, %v157_v54  ;;  %v199_v26 = vand.u32 4294901760, %v1487_v8 }
  0x13   :  { %1063 = vmatpush3.bf16.msra.mxu1 %v1354_v25  ;;  %1159 = vmatpush3.bf16.msra.mxu0 %v1354_v25  ;;  %v1506_v30 = vsub.f32 %v1361_v28, %v70_v31  ;;  %v186_v32 = vsub.f32 %v1472_v0, %v185_v12  ;;  %v193_v33 = vsub.f32 %v1477_v1, %v192_v14  ;;  %v173_v47 = vand.u32 4294901760, %v172_v11 }
  0x14   :  { %1065 = vmatprep.subr.bf16.mxu1 %v1381_v34  ;;  %1161 = vmatprep.subr.bf16.mxu0 %v1381_v34  ;;  %v1515_v22 = vsub.f32 %v1366_v29, %v73_v35  ;;  %v1084_v27 = vpack.c.bf16 %v166_v16, %v159_v9  ;;  %v180_v48 = vand.u32 4294901760, %v179_v19  ;;  %v206_v28 = vand.u32 4294901760, %v1500_v20 }
  0x15   :  { %v1184_v31 = vpack.c.bf16 %v178_v5, %v171_v63  ;;  %v200_v54 = vsub.f32 %v1487_v8, %v199_v26  ;;  %v1522_v56 = vsub.f32 %v1387_v36, %v76_v41  ;;  %v187_v29 = vand.u32 4294901760, %v186_v32 }
  0x16   :  { %v194_v35 = vand.u32 4294901760, %v193_v33  ;;  %v213_v57 = vand.u32 4294901760, %v1506_v30  ;;  %v220_v58 = vand.u32 4294901760, %v1515_v22  ;;  %v1088_v62 = vpack.c.bf16 %v180_v48, %v173_v47 }
  0x17   :  { %1067 = vmatpush3.bf16.msra.mxu1 %v1381_v34  ;;  %1163 = vmatpush3.bf16.msra.mxu0 %v1381_v34  ;;  %v1530_v63 = vsub.f32 %v1392_v37, %v79_v42  ;;  %v1188_v36 = vpack.c.bf16 %v192_v14, %v185_v12  ;;  %v201_v41 = vand.u32 4294901760, %v200_v54  ;;  %v227_v5 = vand.u32 4294901760, %v1522_v56 }
  0x18   :  { %1069 = vmatprep.subr.bf16.mxu1 %v1422_v46  ;;  %1165 = vmatprep.subr.bf16.mxu0 %v1422_v46  ;;  %v1092_v2 = vpack.c.bf16 %v194_v35, %v187_v29  ;;  %v214_v3 = vsub.f32 %v1506_v30, %v213_v57  ;;  %v221_v4 = vsub.f32 %v1515_v22, %v220_v58 }
  0x19   :  { %v234_v37 = vand.u32 4294901760, %v1530_v63  ;;  %v1541_v42 = vsub.f32 %v1407_v43, %v82_v50  ;;  %v1546_v7 = vsub.f32 %v1412_v44, %v85_v51  ;;  %v1192_v9 = vpack.c.bf16 %v206_v28, %v199_v26 }
  0x1a   :  { %v215_v11 = vand.u32 4294901760, %v214_v3  ;;  %v222_v12 = vand.u32 4294901760, %v221_v4  ;;  %v228_v14 = vsub.f32 %v1522_v56, %v227_v5  ;;  %v1196_v51 = vpack.c.bf16 %v220_v58, %v213_v57 }
  0x1b   :  { %1071 = vmatpush3.bf16.msra.mxu1 %v1422_v46  ;;  %1167 = vmatpush3.bf16.msra.mxu0 %v1422_v46  ;;  %v235_v16 = vsub.f32 %v1530_v63, %v234_v37  ;;  %v241_v43 = vand.u32 4294901760, %v1541_v42  ;;  %v248_v50 = vand.u32 4294901760, %v1546_v7  ;;  %v1200_v33 = vpack.c.bf16 %v234_v37, %v227_v5 }
  0x1c   :  { %1073 = vmatprep.subr.bf16.mxu1 %v1440_v53  ;;  %1169 = vmatprep.subr.bf16.mxu0 %v1440_v53  ;;  %v1100_v44 = vpack.c.bf16 %v222_v12, %v215_v11  ;;  %v229_v19 = vand.u32 4294901760, %v228_v14  ;;  %v1116_v54 = vpack.c.bf16 %v1427_v49, %v1414_v45 }
  0x1d   :  { %v249_v26 = vsub.f32 %v1546_v7, %v248_v50 }
  0x1f   :  { %1075 = vmatpush3.bf16.msra.mxu1 %v1440_v53  ;;  %1171 = vmatpush3.bf16.msra.mxu0 %v1440_v53  ;;  %v250_v47 = vand.u32 4294901760, %v249_v26 }
  0x20   :  { %1077 = vmatprep.subr.bf16.mxu1 %v1462_v60  ;;  %1173 = vmatprep.subr.bf16.mxu0 %v1462_v60 }
  0x23   :  { %1079 = vmatpush3.bf16.msra.mxu1 %v1462_v60  ;;  %1175 = vmatpush3.bf16.msra.mxu0 %v1462_v60 }
  0x24   :  { %1081 = vmatprep.subr.bf16.mxu1 %v1080_v15  ;;  %1177 = vmatprep.subr.bf16.mxu0 %v1176_v6 }
  0x26   :  { %871 = vmatmul.mubr.f32.vlgmr.msra.gmra.mrb[0].mxu1 %v134_v21  ;;  %976 = vmatmul.mubr.f32.vlgmr.msra.gmra.mrb[0].mxu0 %v132_v61  ;;  %v207_v61 = vsub.f32 %v1500_v20, %v206_v28  ;;  %v236_v21 = vand.u32 4294901760, %v235_v16  ;;  %v1204_v28 = vpack.c.bf16 %v248_v50, %v241_v43 }
  0x27   :  { %1083 = vmatpush3.bf16.msra.mxu1 %v1080_v15  ;;  %1179 = vmatpush3.bf16.msra.mxu0 %v1176_v6 }
  0x28   :  { %1085 = vmatprep.subr.bf16.mxu1 %v1084_v27  ;;  %1181 = vmatprep.subr.bf16.mxu0 %v1180_v24  ;;  %v208_v6 = vand.u32 4294901760, %v207_v61  ;;  %v1104_v32 = vpack.c.bf16 %v236_v21, %v229_v19 }
  0x29   :  { %905 = vmatprep.mubr.f32.mxu1 %v1320_v17  ;;  %1010 = vmatprep.mubr.f32.mxu0 %v1320_v17 }
  0x2a   :  { %v1096_v15 = vpack.c.bf16 %v208_v6, %v201_v41 }
  0x2b   :  { %1087 = vmatpush3.bf16.msra.mxu1 %v1084_v27  ;;  %1183 = vmatpush3.bf16.msra.mxu0 %v1180_v24  ;;  %v242_v24 = vsub.f32 %v1541_v42, %v241_v43 }
  0x2c   :  { %1089 = vmatprep.subr.bf16.mxu1 %v1088_v62  ;;  %1185 = vmatprep.subr.bf16.mxu0 %v1184_v31 }
  0x2d   :  { %v243_v27 = vand.u32 4294901760, %v242_v24 }
  0x2f   :  { %1091 = vmatpush3.bf16.msra.mxu1 %v1088_v62  ;;  %1187 = vmatpush3.bf16.msra.mxu0 %v1184_v31  ;;  %v1108_v48 = vpack.c.bf16 %v250_v47, %v243_v27  ;;  %v1112_v31 = vpack.c.bf16 %v1396_v39, %v1394_v38  ;;  %v1120_v38 = vpack.c.bf16 %v1456_v59, %v1446_v55 }
  0x30   :  { %1093 = vmatprep.subr.bf16.mxu1 %v1092_v2  ;;  %1189 = vmatprep.subr.bf16.mxu0 %v1188_v36  ;;  %v1124_v39 = vpack.c.bf16 %v1477_v1, %v1472_v0 }
  0x33   :  { %1095 = vmatpush3.bf16.msra.mxu1 %v1092_v2  ;;  %1191 = vmatpush3.bf16.msra.mxu0 %v1188_v36 }
  0x34   :  { %1097 = vmatprep.subr.bf16.mxu1 %v1096_v15  ;;  %1193 = vmatprep.subr.bf16.mxu0 %v1192_v9 }
  0x37   :  { %1099 = vmatpush3.bf16.msra.mxu1 %v1096_v15  ;;  %1195 = vmatpush3.bf16.msra.mxu0 %v1192_v9 }
  0x38   :  { %1101 = vmatprep.subr.bf16.mxu1 %v1100_v44  ;;  %1197 = vmatprep.subr.bf16.mxu0 %v1196_v51 }
  0x3b   :  { %1103 = vmatpush3.bf16.msra.mxu1 %v1100_v44  ;;  %1199 = vmatpush3.bf16.msra.mxu0 %v1196_v51 }
  0x3c   :  { %1105 = vmatprep.subr.bf16.mxu1 %v1104_v32  ;;  %1201 = vmatprep.subr.bf16.mxu0 %v1200_v33 }
  0x3f   :  { %1107 = vmatpush3.bf16.msra.mxu1 %v1104_v32  ;;  %1203 = vmatpush3.bf16.msra.mxu0 %v1200_v33 }
  0x40   :  { %1109 = vmatprep.subr.bf16.mxu1 %v1108_v48  ;;  %1205 = vmatprep.subr.bf16.mxu0 %v1204_v28 }
  0x43   :  { %1111 = vmatpush3.bf16.msra.mxu1 %v1108_v48  ;;  %1207 = vmatpush3.bf16.msra.mxu0 %v1204_v28 }
  0x44   :  { %1113 = vmatprep.subr.bf16.mxu1 %v1112_v31  ;;  %1209 = vmatprep.subr.bf16.mxu0 %v1297_v10 }
  0x46   :  { %906 = vmatmul.mubr.f32.vlgmr.msra.gmra.mrb[0].mxu1 %v1398_v40  ;;  %1011 = vmatmul.mubr.f32.vlgmr.msra.gmra.mrb[0].mxu0 %v1398_v40 }
  0x47   :  { %1115 = vmatpush3.bf16.msra.mxu1 %v1112_v31  ;;  %1211 = vmatpush3.bf16.msra.mxu0 %v1297_v10  ;;  %v1128_v10 = vpack.c.bf16 %v1500_v20, %v1487_v8 }
  0x48   :  { %1117 = vmatprep.subr.bf16.mxu1 %v1116_v54  ;;  %1213 = vmatprep.subr.bf16.mxu0 %v1301_v13 }
  0x49   :  { %940 = vmatprep.mubr.f32.mxu1 %v1343_v23  ;;  %1045 = vmatprep.mubr.f32.mxu0 %v1320_v17  ;;  %v1136_v17 = vpack.c.bf16 %v1530_v63, %v1522_v56  ;;  %v729_v23 = vld [vmem:[%s1603_s2] ss:$0 sm:$0xff] }
  0x4b   :  { %1119 = vmatpush3.bf16.msra.mxu1 %v1116_v54  ;;  %1215 = vmatpush3.bf16.msra.mxu0 %v1301_v13  ;;  %v1132_v13 = vpack.c.bf16 %v1515_v22, %v1506_v30 }
  0x4c   :  { %1121 = vmatprep.subr.bf16.mxu1 %v1120_v38  ;;  %1217 = vmatprep.subr.bf16.mxu0 %v1328_v18 }
  0x4f   :  { %1123 = vmatpush3.bf16.msra.mxu1 %v1120_v38  ;;  %1219 = vmatpush3.bf16.msra.mxu0 %v1328_v18  ;;  %v1140_v18 = vpack.c.bf16 %v1546_v7, %v1541_v42 }
  0x50   :  { %1125 = vmatprep.subr.bf16.mxu1 %v1124_v39  ;;  %1221 = vmatprep.subr.bf16.mxu0 %v1354_v25 }
  0x53   :  { %1127 = vmatpush3.bf16.msra.mxu1 %v1124_v39  ;;  %1223 = vmatpush3.bf16.msra.mxu0 %v1354_v25 }
  0x54   :  { %1129 = vmatprep.subr.bf16.mxu1 %v1128_v10  ;;  %1225 = vmatprep.subr.bf16.mxu0 %v1381_v34 }
  0x57   :  { %1131 = vmatpush3.bf16.msra.mxu1 %v1128_v10  ;;  %1227 = vmatpush3.bf16.msra.mxu0 %v1381_v34 }
  0x58   :  { %1133 = vmatprep.subr.bf16.mxu1 %v1132_v13  ;;  %1229 = vmatprep.subr.bf16.mxu0 %v1422_v46 }
  0x5b   :  { %1135 = vmatpush3.bf16.msra.mxu1 %v1132_v13  ;;  %1231 = vmatpush3.bf16.msra.mxu0 %v1422_v46 }
  0x5c   :  { %1137 = vmatprep.subr.bf16.mxu1 %v1136_v17  ;;  %1233 = vmatprep.subr.bf16.mxu0 %v1440_v53 }
  0x5f   :  { %1139 = vmatpush3.bf16.msra.mxu1 %v1136_v17  ;;  %1235 = vmatpush3.bf16.msra.mxu0 %v1440_v53 }
  0x60   :  { %1141 = vmatprep.subr.bf16.mxu1 %v1140_v18  ;;  %1237 = vmatprep.subr.bf16.mxu0 %v1462_v60 }
  0x63   :  { %1143 = vmatpush3.bf16.msra.mxu1 %v1140_v18  ;;  %1239 = vmatpush3.bf16.msra.mxu0 %v1462_v60 }
  0x66   :  { %941 = vmatmul.mubr.f32.vlgmr.msra.gmra.mrb[0].mxu1 %v1432_v52  ;;  %1046 = vmatmul.mubr.f32.vlgmr.msra.gmra.mrb[0].mxu0 %v1398_v40 }
 0x139   :  { %v942_v25 = vpop.f32.mrb[0].mxu1  ;;  %v1047_v34 = vpop.f32.mrb[0].mxu0 }
 0x13a   :  { %v1240_v45 = vadd.f32 %v942_v25, %v729_v23  ;;  %v397_v46 = vpop.f32.mrb[1].mxu1  ;;  %v713_v49 = vpop.f32.mrb[1].mxu0 }
 0x13b   :  { %v1242_v53 = vadd.f32 %v729_v23, %v397_v46 }
 0x13c   :  { %v1241_v55 = vadd.f32 %v1240_v45, %v1047_v34 }
 0x13d   :  { %v1243_v59 = vadd.f32 %v1242_v53, %v713_v49 }
 0x13e   :  { %724 = vst [vmem:[%s1604_s3 + $0x8] sm:$0xff] %v1241_v55 }
 0x13f   :  { %723 = vst [vmem:[%s1604_s3] sm:$0xff] %v1243_v59 }

</bundles_post_ra>
